<compile_context>
chip_gen: v6e
topology: v6e:2x2x1
jax: 0.10.0
libtpu: 0.0.40
codegen_flags: <defaults>
</compile_context>

<pallas_src>
import functools
import math

import numpy as np
import jax
import jax.numpy as jnp
from jax.experimental import pallas as pl
from jax.experimental.pallas import tpu as pltpu


# ---------------------------------------------------------------------------
# Kernels
# ---------------------------------------------------------------------------

def _separable_kernel(a_h_ref, a_wt_ref, x_ref, o_ref, *, group):
    """(1, CT, H, W) -> (1, CT, TH_out, W_out) via two matmuls per group.

    a_h_ref : (TH_out, H)   row band of A_h for this grid step
    a_wt_ref: (W, W_out)    A_w^T (grid-invariant)
    Channels are processed in groups of `group` so the live f32 intermediate
    stays small (no spills), while input/output DMAs stay CT-sized.
    """
    _, ct, h, w = x_ref.shape
    w_out = a_wt_ref.shape[1]
    cdt = a_wt_ref.dtype                       # compute dtype (f32, or bf16 for nearest)
    a_h = a_h_ref[...]
    a_wt = a_wt_ref[...]
    for g0 in range(0, ct, group):
        g = min(group, ct - g0)
        xg = x_ref[0, pl.ds(g0, g)].astype(cdt)              # (g, H, W)
        tmp = jnp.dot(xg.reshape(g * h, w), a_wt,
                      preferred_element_type=jnp.float32)    # (g*H, W_out)
        # Cast back to the compute dtype (exact for the one-hot 'nearest' path,
        # no-op for f32) so the second matmul also runs a single-dtype MXU op.
        tmp = tmp.reshape(g, h, w_out).astype(cdt)
        for c in range(g):
            o_ref[0, g0 + c] = jnp.dot(a_h, tmp[c],
                                       preferred_element_type=jnp.float32)


def _fused_kernel(b_ref, x_ref, o_ref):
    """(1, CT, H*W) -> (1, CT, H_out*W_out): one matmul, lane-dense stores."""
    x = x_ref[0].astype(b_ref.dtype)                         # (CT, H*W)
    o_ref[0] = jnp.dot(x, b_ref[...], preferred_element_type=jnp.float32)


# ---------------------------------------------------------------------------
# Resampling matrices (host-side numpy, cached => compile-time constants)
# ---------------------------------------------------------------------------

@functools.lru_cache(maxsize=None)
def _nearest_matrix(n_in: int, n_out: int, scale: float):
    """One-hot selection matrix. PyTorch nearest with explicit scale_factor:
    src = min(floor(dst / scale), n_in - 1)."""
    dst = np.arange(n_out, dtype=np.float64)
    src = np.minimum(np.floor(dst / float(scale)).astype(np.int64), n_in - 1)
    src = np.maximum(src, 0)
    m = (np.arange(n_in)[None, :] == src[:, None]).astype(np.float32)
    return m                                                  # (n_out, n_in)


@functools.lru_cache(maxsize=None)
def _bilinear_matrix(n_in: int, n_out: int):
    """Linear interpolation matrix, align_corners=True (as in the module)."""
    if n_out == 1 or n_in == 1:
        src = np.zeros((n_out,), np.float64)
    else:
        src = np.arange(n_out, dtype=np.float64) * ((n_in - 1) / (n_out - 1))
    i0 = np.clip(np.floor(src).astype(np.int64), 0, n_in - 1)
    i1 = np.clip(i0 + 1, 0, n_in - 1)
    wgt = (src - i0).astype(np.float64)
    cols = np.arange(n_in)
    m = ((cols[None, :] == i0[:, None]) * (1.0 - wgt)[:, None]
         + (cols[None, :] == i1[:, None]) * wgt[:, None])
    return m.astype(np.float32)                               # (n_out, n_in)


@functools.lru_cache(maxsize=None)
def _fused_matrix(h, w, h_out, w_out, scale, mode):
    if mode == "nearest":
        a_h = _nearest_matrix(h, h_out, scale)
        a_w = _nearest_matrix(w, w_out, scale)
    else:
        a_h = _bilinear_matrix(h, h_out)
        a_w = _bilinear_matrix(w, w_out)
    # B[(h,w),(ho,wo)] = A_h[ho,h] * A_w[wo,w]
    return np.kron(a_h.T, a_w.T).astype(np.float32)           # (H*W, Hout*Wout)


# ---------------------------------------------------------------------------
# VMEM / tiling heuristics (generation-aware, layout-padding-aware)
# ---------------------------------------------------------------------------

_HEADROOM = 2 * 2 ** 20        # Mosaic internal scratch / semaphores headroom
_TMP_BUDGET = 256 * 1024       # live f32 intermediate per channel group
_MAX_CT = 32                   # cap on per-step channel tile (code-size sanity)


@functools.lru_cache(maxsize=None)
def _vmem_cap_bytes() -> int:
    """~75% of physical VMEM: ~48 MiB on v7x, ~96 MiB on v5e/v6e."""
    try:
        phys = int(pltpu.get_tpu_info().vmem_capacity_bytes)
    except Exception:
        phys = 64 * 2 ** 20    # conservative fallback, valid on every generation
    return (phys * 3) // 4


def _sublane(itemsize: int) -> int:
    return {1: 32, 2: 16, 4: 8}.get(itemsize, 8)


def _pad_bytes(rows: int, cols: int, itemsize: int) -> int:
    """VMEM footprint of a (rows, cols) tile including (sublane,128) padding."""
    sl = _sublane(itemsize)
    return (-(-rows // sl) * sl) * (-(-cols // 128) * 128) * itemsize


def _divisors(n: int):
    return [d for d in range(1, n + 1) if n % d == 0]


def _sep_block_bytes(ct, th_out, h, w, w_out, in_isz, w_isz):
    grp = max(1, min(ct, _TMP_BUDGET // max(1, _pad_bytes(h, w_out, 4))))
    return (2 * ct * _pad_bytes(h, w, in_isz)          # x block (double-buffered)
            + 2 * ct * _pad_bytes(th_out, w_out, 4)    # output block
            + 2 * _pad_bytes(th_out, h, w_isz)         # A_h row band
            + 2 * _pad_bytes(w, w_out, w_isz)          # A_w^T
            + grp * (_pad_bytes(h, w_out, 4)           # live f32 tmp
                     + _pad_bytes(h, w, w_isz)))       # cast copy of x group


def _fused_block_bytes(ct, hw, howo, in_isz, w_isz):
    return (2 * _pad_bytes(ct, hw, in_isz)             # x block
            + 2 * _pad_bytes(ct, howo, 4)              # output block
            + 2 * _pad_bytes(hw, howo, w_isz)          # B (Kronecker) matrix
            + _pad_bytes(ct, hw, w_isz))               # in-kernel cast copy


def _pick_separable_tiles(n, c, h, w, h_out, w_out, in_isz, w_isz, vmem_cap):
    sub_req = 8 if w_isz == 4 else 16
    th_cands = sorted({h_out} | {d for d in _divisors(h_out) if d % sub_req == 0},
                      reverse=True)
    ct_cands = [d for d in _divisors(c) if d <= _MAX_CT]
    fits = []
    for th in th_cands:
        for ct in ct_cands:
            bb = _sep_block_bytes(ct, th, h, w, w_out, in_isz, w_isz)
            if bb + _HEADROOM > vmem_cap:
                continue
            steps = n * (c // ct) * (h_out // th)
            fits.append((steps >= 2, ct * th, ct, th, bb))
    if not fits:
        raise ValueError(
            f"MyUpsample: plane {h}x{w} -> {h_out}x{w_out} too large for VMEM "
            f"even at the smallest channel/row tile")
    multi = [f for f in fits if f[0]]          # prefer >=2 grid steps (2 TCs)
    pool = multi if multi else fits
    _, _, ct, th, bb = max(pool, key=lambda f: (f[1], f[2]))
    return ct, th, bb


def _pick_fused_ct(n, c, hw, howo, in_isz, w_isz, vmem_cap):
    sub_req = max(_sublane(in_isz), 8)
    fits = []
    for ct in _divisors(c):
        if not (ct % sub_req == 0 or ct == c):
            continue
        bb = _fused_block_bytes(ct, hw, howo, in_isz, w_isz)
        if bb + _HEADROOM > vmem_cap:
            continue
        steps = n * (c // ct)
        fits.append((steps >= 2, ct, bb))
    if not fits:
        return None
    multi = [f for f in fits if f[0]]
    pool = multi if multi else fits
    _, ct, bb = max(pool, key=lambda f: f[1])
    return ct, bb


def _vmem_limit(blk_bytes: int, vmem_cap: int) -> int:
    return int(min(vmem_cap, max(blk_bytes + 4 * 2 ** 20, 16 * 2 ** 20)))


# ---------------------------------------------------------------------------
# Public wrapper (equivalent of MyUpsample.forward)
# ---------------------------------------------------------------------------

def my_upsample(x, scale_factor, mode: str = "nearest", *,
                use_fused=None, c_tile=None, h_out_tile=None):
    """Pallas equivalent of MyUpsample.forward (x.float() then interpolate)."""
    n, c, h, w = x.shape
    sf = float(scale_factor)
    h_out = int(math.floor(h * sf))
    w_out = int(math.floor(w * sf))
    if h_out < 1 or w_out < 1:
        raise ValueError("scale_factor too small for this input size")
    if mode not in ("nearest", "bilinear"):
        # TODO(synk): other interpolate modes (bicubic, area, trilinear, ...).
        raise NotImplementedError(f"mode={mode!r} not implemented")

    in_isz = jnp.dtype(x.dtype).itemsize
    # bf16 operands only where exact (one-hot 'nearest'); 'bilinear' keeps f32
    # math to match the module's x.float() semantics.
    wdt = jnp.bfloat16 if (mode == "nearest" and x.dtype == jnp.bfloat16) else jnp.float32
    w_isz = jnp.dtype(wdt).itemsize
    vmem_cap = _vmem_cap_bytes()

    if mode == "nearest":
        a_h_np = _nearest_matrix(h, h_out, sf)
        a_w_np = _nearest_matrix(w, w_out, sf)
    else:
        a_h_np = _bilinear_matrix(h, h_out)
        a_w_np = _bilinear_matrix(w, w_out)

    hw, howo = h * w, h_out * w_out
    fused_b_bytes = _pad_bytes(hw, howo, w_isz)
    fused_pick = _pick_fused_ct(n, c, hw, howo, in_isz, w_isz, vmem_cap)
    fused_b_cap = vmem_cap // (6 if w_isz == 2 else 10)
    if use_fused is None:
        use_fused = (w_out % 128 != 0            # separable stores would be lane-masked
                     and fused_b_bytes <= fused_b_cap
                     and fused_pick is not None)
    if use_fused and fused_pick is None:
        raise ValueError("fused path requested but no channel tile fits VMEM")

    if use_fused:
        ct, blk_bytes = fused_pick
        b = jnp.asarray(_fused_matrix(h, w, h_out, w_out, sf, mode), dtype=wdt)
        x_in = x.reshape(n, c, hw)                       # metadata-only reshape
        grid = (n, c // ct)
        out_flat = pl.pallas_call(
            _fused_kernel,
            out_shape=jax.ShapeDtypeStruct((n, c, howo), jnp.float32),
            grid=grid,
            in_specs=[
                pl.BlockSpec((hw, howo), lambda i, j: (0, 0)),      # B (invariant)
                pl.BlockSpec((1, ct, hw), lambda i, j: (i, j, 0)),  # x block
            ],
            out_specs=pl.BlockSpec((1, ct, howo), lambda i, j: (i, j, 0)),
            compiler_params=pltpu.CompilerParams(
                dimension_semantics=("parallel", "parallel"),
                vmem_limit_bytes=_vmem_limit(blk_bytes, vmem_cap)),
        )(b, x_in)
        return out_flat.reshape(n, c, h_out, w_out)      # metadata-only reshape

    # ---------------- general (separable) path ----------------
    ct, th_out, blk_bytes = _pick_separable_tiles(
        n, c, h, w, h_out, w_out, in_isz, w_isz, vmem_cap)
    if c_tile is not None:
        assert c % c_tile == 0 and c_tile <= _MAX_CT
        ct = c_tile
    if h_out_tile is not None:
        assert h_out % h_out_tile == 0
        assert h_out_tile == h_out or h_out_tile % (8 if w_isz == 4 else 16) == 0
        th_out = h_out_tile
    if c_tile is not None or h_out_tile is not None:
        blk_bytes = _sep_block_bytes(ct, th_out, h, w, w_out, in_isz, w_isz)

    grp = max(1, min(ct, _TMP_BUDGET // max(1, _pad_bytes(h, w_out, 4))))
    a_h = jnp.asarray(a_h_np, dtype=wdt)                 # (H_out, H)
    a_wt = jnp.asarray(a_w_np.T, dtype=wdt)              # (W, W_out)
    grid = (n, c // ct, h_out // th_out)                 # r last -> x block reused

    return pl.pallas_call(
        functools.partial(_separable_kernel, group=grp),
        out_shape=jax.ShapeDtypeStruct((n, c, h_out, w_out), jnp.float32),
        grid=grid,
        in_specs=[
            pl.BlockSpec((th_out, h), lambda i, j, r: (r, 0)),           # A_h band
            pl.BlockSpec((w, w_out), lambda i, j, r: (0, 0)),            # A_w^T
            pl.BlockSpec((1, ct, h, w), lambda i, j, r: (i, j, 0, 0)),   # x block
        ],
        out_specs=pl.BlockSpec((1, ct, th_out, w_out),
                               lambda i, j, r: (i, j, r, 0)),
        compiler_params=pltpu.CompilerParams(
            dimension_semantics=("parallel", "parallel", "parallel"),
            vmem_limit_bytes=_vmem_limit(blk_bytes, vmem_cap)),
    )(a_h, a_wt, x)


# ---------------------------------------------------------------------------
# Self-test
# ---------------------------------------------------------------------------

def _ref_nearest(x, s):
    xf = x.astype(jnp.float32)
    return jnp.repeat(jnp.repeat(xf, s, axis=2), s, axis=3)


def _ref_bilinear(x, s):
    xf = x.astype(jnp.float32)
    _, _, h, w = x.shape
    a_h = jnp.asarray(_bilinear_matrix(h, h * s), jnp.float32)
    a_w = jnp.asarray(_bilinear_matrix(w, w * s), jnp.float32)
    return jnp.einsum("oi,ncij,pj->ncop", a_h, xf, a_w)


if __name__ == "__main__":
    key = jax.random.PRNGKey(0)
    x = jax.random.normal(key, (2, 8, 16, 16), dtype=jnp.float32)
    scale = 2
    ref_n = _ref_nearest(x, scale)
    ref_b = _ref_bilinear(x, scale)

    # nearest (module default), auto path (fused lane-dense for small planes)
    out = my_upsample(x, scale, mode="nearest")
    jax.block_until_ready(out)
    assert out.shape == (2, 8, 32, 32) and out.dtype == jnp.float32
    assert jnp.allclose(out, ref_n, atol=1e-6), "nearest (fused) mismatch"

    # nearest, separable path (general / large-plane kernel), full-plane tile
    out_sep = my_upsample(x, scale, mode="nearest", use_fused=False)
    jax.block_until_ready(out_sep)
    assert jnp.allclose(out_sep, ref_n, atol=1e-6), "nearest (separable) mismatch"

    # nearest, separable path with forced H_out row tiling (A_h band index_map)
    out_tiled = my_upsample(x, scale, mode="nearest", use_fused=False, h_out_tile=8)
    jax.block_until_ready(out_tiled)
    assert jnp.allclose(out_tiled, ref_n, atol=1e-6), "nearest (H-tiled) mismatch"

    # bilinear, align_corners=True — both paths
    out_bf = my_upsample(x, scale, mode="bilinear")
    out_bs = my_upsample(x, scale, mode="bilinear", use_fused=False)
    jax.block_until_ready((out_bf, out_bs))
    assert jnp.allclose(out_bf, ref_b, atol=1e-4), "bilinear (fused) mismatch"
    assert jnp.allclose(out_bs, ref_b, atol=1e-4), "bilinear (separable) mismatch"

    # bf16 input: native bf16 operands for 'nearest' (exact one-hot selection)
    xb = x.astype(jnp.bfloat16)
    ref_nb = _ref_nearest(xb, scale)
    out_b = my_upsample(xb, scale, mode="nearest")
    out_b_sep = my_upsample(xb, scale, mode="nearest", use_fused=False)
    jax.block_until_ready((out_b, out_b_sep))
    assert out_b.dtype == jnp.float32
    assert jnp.allclose(out_b, ref_nb, atol=1e-6), "bf16 nearest (fused) mismatch"
    assert jnp.allclose(out_b_sep, ref_nb, atol=1e-6), "bf16 nearest (separable) mismatch"

    print("KERNEL_OK")
</pallas_src>

<mosaic_0001>
module attributes {stable_mosaic.version = 11 : i64} {
  func.func @_fused_kernel(%arg0: i32, %arg1: i32, %arg2: memref<256x1024xf32, #tpu.memory_space<vmem>>, %arg3: memref<1x8x256xf32, #tpu.memory_space<vmem>>, %arg4: memref<1x8x1024xf32, #tpu.memory_space<vmem>>) attributes {dimension_semantics = [#tpu.dimension_semantics<parallel>, #tpu.dimension_semantics<parallel>], iteration_bounds = array<i64: 2, 1>, scalar_prefetch = 0 : i64, scratch_operands = 0 : i64, tpu.core_type = #tpu.core_type<tc>, window_params = [{pipeline_mode = #tpu.pipeline_mode<synchronous>, transform_indices = @transform_0, window_bounds = array<i64: 256, 1024>}, {transform_indices = @transform_1, window_bounds = array<i64: 1, 8, 256>}, {transform_indices = @transform_2, window_bounds = array<i64: 1, 8, 1024>}]} {
    %c0 = arith.constant 0 : index
    %c0_0 = arith.constant 0 : index
    %c0_1 = arith.constant 0 : index
    %0 = vector.load %arg3[%c0, %c0_0, %c0_1] : memref<1x8x256xf32, #tpu.memory_space<vmem>>, vector<1x8x256xf32>
    %1 = vector.shape_cast %0 : vector<1x8x256xf32> to vector<8x256xf32>
    %c0_2 = arith.constant 0 : index
    %c0_3 = arith.constant 0 : index
    %2 = vector.load %arg2[%c0_2, %c0_3] : memref<256x1024xf32, #tpu.memory_space<vmem>>, vector<256x1024xf32>
    %cst = arith.constant dense<0.000000e+00> : vector<8x1024xf32>
    %3 = tpu.matmul %1, %2, %cst {dimension_numbers = #tpu.dot_dimension_numbers<[1], [0], [0], [1], [0, 0, 1, 1], [], []>} : vector<8x256xf32>, vector<256x1024xf32>, vector<8x1024xf32> -> vector<8x1024xf32>
    %c0_4 = arith.constant 0 : index
    %c0_5 = arith.constant 0 : index
    %c0_6 = arith.constant 0 : index
    %4 = vector.load %arg4[%c0_4, %c0_5, %c0_6] : memref<1x8x1024xf32, #tpu.memory_space<vmem>>, vector<1x8x1024xf32>
    %5 = vector.shape_cast %4 : vector<1x8x1024xf32> to vector<8x1024xf32>
    %6 = vector.shape_cast %3 : vector<8x1024xf32> to vector<1x8x1024xf32>
    tpu.vector_store %arg4[%c0_4, %c0_5, %c0_6], %6 {strides = array<i32>} : memref<1x8x1024xf32, #tpu.memory_space<vmem>>, vector<1x8x1024xf32>,
    return
  }
  func.func @transform_0(%arg0: i32, %arg1: i32) -> (i32, i32) {
    %c0_i32 = arith.constant 0 : i32
    %c0_i32_0 = arith.constant 0 : i32
    %c0_i32_1 = arith.constant 0 : i32
    return %c0_i32, %c0_i32_0 : i32, i32
  }
  func.func @transform_1(%arg0: i32, %arg1: i32) -> (i32, i32, i32) {
    %c0_i32 = arith.constant 0 : i32
    %c0_i32_0 = arith.constant 0 : i32
    return %arg0, %arg1, %c0_i32 : i32, i32, i32
  }
  func.func @transform_2(%arg0: i32, %arg1: i32) -> (i32, i32, i32) {
    %c0_i32 = arith.constant 0 : i32
    %c0_i32_0 = arith.constant 0 : i32
    return %arg0, %arg1, %c0_i32 : i32, i32, i32
  }
}

</mosaic_0001>

<bundles_post_ra>
// kernel: tpu_custom_call.1
= control target key start
LH: loop header
LB: loop body
LE: loop exit
PB: predicated region body
PF: predicated region fallthrough
CT: control target
= control target key end

     0   :  { %7 = vsyncpa [#allocation3], 0  ;;  %s1306_s0 = inlined_call_operand.hbm [shape: f32[256,1024], index: 0, kind: input, shape index: {}]   ;;  %s1307_s1 = inlined_call_operand.hbm [shape: f32[2,8,256], index: 1, kind: input, shape index: {}]   ;;  %s1308_s2 = inlined_call_operand.hbm [shape: f32[2,8,1024], index: 2, kind: output, shape index: {}]  }
   0x1   :  { %8 = vsyncpa [#allocation6], 0 }
   0x2   :  { %10 = vsyncpa [#allocation6 + $0x1], 0 }
   0x3   :  { %11 = vsyncpa [#allocation4], 0 }
   0x4   :  { %13 = vsyncpa [#allocation4 + $0x1], 0  ;;  %s1110_s9 = smov 0   ;;  %s1112_s10 = smov 0  }
   0x5   :  { %s1114_s11 = smov 0   ;;  %s1116_s12 = smov 0  }
   0x6   :  { %s1118_s13 = smov 0   ;;  %s1120_s14 = smov 0  }
   0x7 LB: > { %s856_s15 = sadd.s32 4294967295, %s1088_s14   ;;  %s857_s16 = sadd.s32 4294967294, %s1088_s14   ;;  %s1088_s14 = sphi %s1120_s14, %s19_s14   ;;  %s1084_s13 = sphi %s1118_s13, %s1326_s13   ;;  %s1080_s12 = sphi %s1116_s12, %s1325_s12   ;;  %s1076_s11 = sphi %s1114_s11, %s1324_s11   ;;  %s1072_s10 = sphi %s1112_s10, %s1323_s10   ;;  %s1068_s9 = sphi %s1110_s9, %s1322_s9  }
   0x8   : > { %p74_p0 = scmp.ne.s32.totalorder %s1072_s10, %s1068_s9  ;;  %p1144_p1 = scmp.eq.s32.totalorder %s856_s15, 0 }
   0x9   : > { %p1148_p2 = scmp.eq.s32.totalorder %s856_s15, 1  ;;  %p106_p3 = scmp.eq.s32.totalorder %s857_s16, 1 }
   0xa   : > { %p1154_p4 = por %p1144_p1, %p74_p0  ;;  %p858_p5 = scmp.ge.s32.totalorder %s1088_s14, 1 }
   0xb   : > { %p1159_p6 = por %p106_p3, %p74_p0  ;;  %p113_p7 = scmp.lt.s32.totalorder %s1088_s14, 3 }
   0xc   : > { %s1312_s19 = scalar_select %p1154_p4, 1, 0 }
   0xd   : > { %s1313_s20 = scalar_select %p1159_p6, 1, 0 }
   0xe   : > { %p1164_p8 = pnand %p858_p5, %p113_p7  ;;  %s1090_s22 = smov [#allocation2]  }
   0xf   : > { %s125_s23 = sshll.u32 %s1090_s22, 4  ;;  %s31_s25 = sadd.s32 1, %s1084_s13  ;;  %s126_s23 = int_to_ptr.vmem [resolvable:$true] %s125_s23 }
  0x10   : > { %p883_p9 = pneg %p1164_p8  ;;  %s961_s26 = scalar_lea.vmem %s126_s23, 32768 }
  0x11   : > { %p962_p13 = scmp.ne.s32.totalorder %s126_s23, %s961_s26  ;;  %p969_p5 = scmp.lt.s32.totalorder %s126_s23, %s126_s23 }
  0x12   : > { %p1173_p11 = pnand %p883_p9, %p1144_p1  ;;  %p970_p7 = scmp.lt.s32.totalorder %s961_s26, %s961_s26 }
  0x14   : > { %p952_p12 = pneg %p1173_p11  ;;  %p971_p6 = por %p970_p7, %p969_p5 }
  0x16   : > { %p964_p0 = pnand %p962_p13, %p952_p12 }
  0x18   : > { %p965_p3 = pneg %p964_p0 }
  0x1a   : > { %p972_p4 = pnand %p971_p6, %p965_p3 }
  0x1c   : > { %975 = shalt.err (!%p972_p4)
}
  0x1d   : > { %s1091_s27 = smov 1024   ;;  %s1092_s28 = smov 64  }
  0x1e   : > { %886 = dma.hbm_to_vmem [thread:$0]  (!%p1173_p11), %s1306_s0, 32768, %s126_s23, [#allocation3], %s1091_s27, %s1091_s27, %s1092_s28  }
  0x1f   : > { %p33_p6 = scmp.ge.s32.totalorder %s31_s25, 2  ;;  %s61_s3 = sadd.s32 1, %s1076_s11 }
  0x20   : > { %p68_p4 = scmp.ne.s32.totalorder %s1076_s11, %s1072_s10  ;;  %p69_p9 = scmp.eq.s32.totalorder %s1088_s14, 0 }
  0x21   : > { %s1328_s25 = smov (%p33_p6, %s31_s25), 0  ;;  %p896_p0 = scmp.lt.s32.totalorder %s1088_s14, 2 }
  0x22   : > { %p1191_p12 = por %p69_p9, %p68_p4  ;;  %p1197_p13 = por %p1148_p2, %p68_p4 }
  0x23   : > { %s56_s6 = ssub.s32 %s1084_s13, %s1328_s25  ;;  %s139_s7 = sand.u32 1, %s1076_s11  }
  0x24   : > { %p59_p11 = scmp.eq.s32.totalorder %s56_s6, 0  ;;  %s861_s8 = sshll.u32 %s139_s7, 4 }
  0x25   : > { %s873_s16 = sshll.u32 %s1084_s13, 8  ;;  %s143_s26 = scalar_lea.vmem [#allocation5], %s861_s8 }
  0x26   : > { %s1206_s15 = scalar_select %p59_p11, %s1076_s11, %s61_s3  }
  0x27   : > { %s151_s24 = scalar_lea.hbm %s1307_s1, %s873_s16  ;;  %s153_s27 = sshll.u32 %s143_s26, 4  ;;  %s154_s27 = int_to_ptr.vmem [resolvable:$true] %s153_s27 }
  0x28   : > { %p1214_p2 = pnand %p896_p0, %p1191_p12  ;;  %s140_s28 = scalar_lea.sflag [#allocation6], %s139_s7 }
  0x29   : > { %s989_s29 = scalar_lea.vmem %s154_s27, 256  ;;  %s1093_s30 = smov [#allocation5]  }
  0x2a   : > { %p978_p3 = pneg %p1214_p2  ;;  %p990_p5 = scmp.ne.s32.totalorder %s154_s27, %s989_s29 }
  0x2b   : > { %s994_s3 = sshll.u32 %s1093_s30, 4  ;;  %s995_s3 = int_to_ptr.vmem [resolvable:$false] %s994_s3 }
  0x2c   : > { %p992_p7 = pnand %p990_p5, %p978_p3  ;;  %s996_s6 = scalar_lea.vmem %s995_s3, 512 }
  0x2d   : > { %p997_p4 = scmp.lt.s32.totalorder %s154_s27, %s995_s3  ;;  %p998_p9 = scmp.lt.s32.totalorder %s996_s6, %s989_s29 }
  0x2e   : > { %p993_p6 = pneg %p992_p7 }
  0x2f   : > { %p999_p11 = por %p998_p9, %p997_p4 }
  0x31   : > { %p1000_p10 = pnand %p999_p11, %p993_p6 }
  0x33   : > { %1003 = shalt.err (!%p1000_p10)
}
  0x34   : > { %890 = dma.hbm_to_vmem [thread:$0]  (!%p1214_p2), %s151_s24, 256, %s154_s27, %s140_s28  }
  0x35   : > { %162 = sbr.rel (%p1164_p8) target bundleno = 403 (0x193), region = 28 }
  0x3a   : > { %1055 = dma.done.wait (%p1144_p1), [#allocation3], 32768  }
  0x3b   : > { %1057 = vsyncadd (%p1144_p1), [#allocation3], 4294934528  ;;  %s1229_s4 = sand.u32 1, %s1072_s10   ;;  %p1319_p10 = scmp.ne.s32.totalorder %s1312_s19, 0 }
  0x3c   : > { %s866_s7 = sshll.u32 %s1229_s4, 4  ;;  %s169_s8 = scalar_lea.sflag [#allocation6], %s1229_s4 }
  0x3d   : > { %s1233_s16 = scalar_lea.vmem [#allocation5], %s866_s7 }
  0x3e   : > { %1059 = dma.done.wait (%p1319_p10), %s169_s8, 256  }
  0x3f   : > { %1061 = vsyncadd (%p1319_p10), %s169_s8, 4294967040  ;;  %v316_v0 = vld [vmem:[#allocation2 + $0x3c8] sm:$0xff]  ;;  %v318_v1 = vld [vmem:[#allocation2 + $0x3d8] sm:$0xff]  ;;  %s867_s17 = sshll.u32 %s1229_s4, 6  ;;  %s874_s21 = sshll.u32 %s1080_s12, 10 }
  0x40   : > { %v315_v2 = vld [vmem:[#allocation2 + $0x3c0] sm:$0xff]  ;;  %451 = vmatprep.subr.mxu0 %v316_v0  ;;  %522 = vmatprep.subr.mxu1 %v318_v1  ;;  %v317_v3 = vld [vmem:[#allocation2 + $0x3d0] sm:$0xff]  ;;  %v308_v4 = vld [vmem:[#allocation2 + $0x388] sm:$0xff]  ;;  %s192_s19 = scalar_lea.vmem [#allocation7], %s867_s17  ;;  %s1258_s26 = scalar_lea.hbm %s1308_s2, %s874_s21 }
  0x41   : > { %v310_v5 = vld [vmem:[#allocation2 + $0x398] sm:$0xff]  ;;  %452 = vmatpush1.msra.mxu0 %v315_v2  ;;  %523 = vmatpush1.msra.mxu1 %v317_v3  ;;  %v307_v6 = vld [vmem:[#allocation2 + $0x380] sm:$0xff]  ;;  %v309_v7 = vld [vmem:[#allocation2 + $0x390] sm:$0xff]  ;;  %s760_s22 = sshll.u32 %s192_s19, 4  ;;  %s744_s12 = scalar_lea.sflag [#allocation4], %s1229_s4  ;;  %s1260_s22 = int_to_ptr.vmem [resolvable:$true] %s760_s22 }
  0x42   : > { %v300_v8 = vld [vmem:[#allocation2 + $0x348] sm:$0xff]  ;;  %453 = vmatprep.subr.mxu0 %v308_v4  ;;  %524 = vmatprep.subr.mxu1 %v310_v5  ;;  %v302_v9 = vld [vmem:[#allocation2 + $0x358] sm:$0xff]  ;;  %v299_v10 = vld [vmem:[#allocation2 + $0x340] sm:$0xff]  ;;  %s1004_s27 = scalar_lea.vmem %s1260_s22, 1024  ;;  %s1094_s18 = smov [#allocation7]  }
  0x43   : > { %v301_v11 = vld [vmem:[#allocation2 + $0x350] sm:$0xff]  ;;  %454 = vmatpush1.msra.mxu0 %v307_v6  ;;  %525 = vmatpush1.msra.mxu1 %v309_v7  ;;  %v292_v12 = vld [vmem:[#allocation2 + $0x308] sm:$0xff]  ;;  %v294_v13 = vld [vmem:[#allocation2 + $0x318] sm:$0xff]  ;;  %p1005_p1 = scmp.ne.s32.totalorder %s1260_s22, %s1004_s27  ;;  %s1008_s28 = sshll.u32 %s1094_s18, 4  ;;  %s1009_s28 = int_to_ptr.vmem [resolvable:$false] %s1008_s28 }
  0x44   : > { %455 = vmatprep.subr.mxu0 %v300_v8  ;;  %526 = vmatprep.subr.mxu1 %v302_v9  ;;  %v291_v14 = vld [vmem:[#allocation2 + $0x300] sm:$0xff]  ;;  %v293_v15 = vld [vmem:[#allocation2 + $0x310] sm:$0xff]  ;;  %v284_v16 = vld [vmem:[#allocation2 + $0x2c8] sm:$0xff]  ;;  %s1010_s29 = scalar_lea.vmem %s1009_s28, 2048  ;;  %p1011_p0 = scmp.lt.s32.totalorder %s1260_s22, %s1009_s28 }
  0x45   : > { %456 = vmatpush1.msra.mxu0 %v299_v10  ;;  %527 = vmatpush1.msra.mxu1 %v301_v11  ;;  %v286_v17 = vld [vmem:[#allocation2 + $0x2d8] sm:$0xff]  ;;  %v283_v18 = vld [vmem:[#allocation2 + $0x2c0] sm:$0xff]  ;;  %v285_v19 = vld [vmem:[#allocation2 + $0x2d0] sm:$0xff]  ;;  %p1006_p8 = pnand %p1005_p1, %p1197_p13  ;;  %p1012_p2 = scmp.lt.s32.totalorder %s1010_s29, %s1004_s27 }
  0x46   : > { %457 = vmatprep.subr.mxu0 %v292_v12  ;;  %528 = vmatprep.subr.mxu1 %v294_v13  ;;  %v276_v20 = vld [vmem:[#allocation2 + $0x288] sm:$0xff]  ;;  %v278_v21 = vld [vmem:[#allocation2 + $0x298] sm:$0xff]  ;;  %v275_v22 = vld [vmem:[#allocation2 + $0x280] sm:$0xff] }
  0x47   : > { %458 = vmatpush1.msra.mxu0 %v291_v14  ;;  %529 = vmatpush1.msra.mxu1 %v293_v15  ;;  %v277_v23 = vld [vmem:[#allocation2 + $0x290] sm:$0xff]  ;;  %v268_v24 = vld [vmem:[#allocation2 + $0x248] sm:$0xff]  ;;  %v270_v25 = vld [vmem:[#allocation2 + $0x258] sm:$0xff]  ;;  %p1007_p12 = pneg %p1006_p8  ;;  %p1013_p3 = por %p1012_p2, %p1011_p0 }
  0x48   : > { %459 = vmatprep.subr.mxu0 %v284_v16  ;;  %530 = vmatprep.subr.mxu1 %v286_v17  ;;  %v267_v26 = vld [vmem:[#allocation2 + $0x240] sm:$0xff]  ;;  %v269_v27 = vld [vmem:[#allocation2 + $0x250] sm:$0xff]  ;;  %v260_v28 = vld [vmem:[#allocation2 + $0x208] sm:$0xff] }
  0x49   : > { %460 = vmatpush1.msra.mxu0 %v283_v18  ;;  %531 = vmatpush1.msra.mxu1 %v285_v19  ;;  %v262_v29 = vld [vmem:[#allocation2 + $0x218] sm:$0xff]  ;;  %v259_v30 = vld [vmem:[#allocation2 + $0x200] sm:$0xff]  ;;  %v261_v31 = vld [vmem:[#allocation2 + $0x210] sm:$0xff]  ;;  %p1014_p5 = pnand %p1013_p3, %p1007_p12 }
  0x4a   : > { %461 = vmatprep.subr.mxu0 %v276_v20  ;;  %532 = vmatprep.subr.mxu1 %v278_v21  ;;  %v252_v32 = vld [vmem:[#allocation2 + $0x1c8] sm:$0xff]  ;;  %v254_v33 = vld [vmem:[#allocation2 + $0x1d8] sm:$0xff]  ;;  %v251_v34 = vld [vmem:[#allocation2 + $0x1c0] sm:$0xff] }
  0x4b   : > { %462 = vmatpush1.msra.mxu0 %v275_v22  ;;  %533 = vmatpush1.msra.mxu1 %v277_v23  ;;  %v253_v35 = vld [vmem:[#allocation2 + $0x1d0] sm:$0xff]  ;;  %v244_v36 = vld [vmem:[#allocation2 + $0x188] sm:$0xff]  ;;  %v246_v37 = vld [vmem:[#allocation2 + $0x198] sm:$0xff] }
  0x4c   : > { %463 = vmatprep.subr.mxu0 %v268_v24  ;;  %534 = vmatprep.subr.mxu1 %v270_v25  ;;  %v243_v38 = vld [vmem:[#allocation2 + $0x180] sm:$0xff]  ;;  %v245_v39 = vld [vmem:[#allocation2 + $0x190] sm:$0xff]  ;;  %v236_v40 = vld [vmem:[#allocation2 + $0x148] sm:$0xff] }
  0x4d   : > { %464 = vmatpush1.msra.mxu0 %v267_v26  ;;  %535 = vmatpush1.msra.mxu1 %v269_v27  ;;  %v238_v41 = vld [vmem:[#allocation2 + $0x158] sm:$0xff]  ;;  %v235_v42 = vld [vmem:[#allocation2 + $0x140] sm:$0xff]  ;;  %v237_v43 = vld [vmem:[#allocation2 + $0x150] sm:$0xff] }
  0x4e   : > { %465 = vmatprep.subr.mxu0 %v260_v28  ;;  %536 = vmatprep.subr.mxu1 %v262_v29  ;;  %v228_v44 = vld [vmem:[#allocation2 + $0x108] sm:$0xff]  ;;  %v230_v45 = vld [vmem:[#allocation2 + $0x118] sm:$0xff]  ;;  %v227_v46 = vld [vmem:[#allocation2 + $0x100] sm:$0xff] }
  0x4f   : > { %466 = vmatpush1.msra.mxu0 %v259_v30  ;;  %537 = vmatpush1.msra.mxu1 %v261_v31  ;;  %v229_v47 = vld [vmem:[#allocation2 + $0x110] sm:$0xff]  ;;  %v220_v48 = vld [vmem:[#allocation2 + $0xc8] sm:$0xff]  ;;  %v222_v49 = vld [vmem:[#allocation2 + $0xd8] sm:$0xff] }
  0x50   : > { %467 = vmatprep.subr.mxu0 %v252_v32  ;;  %538 = vmatprep.subr.mxu1 %v254_v33  ;;  %v219_v50 = vld [vmem:[#allocation2 + $0xc0] sm:$0xff]  ;;  %v221_v51 = vld [vmem:[#allocation2 + $0xd0] sm:$0xff]  ;;  %v212_v52 = vld [vmem:[#allocation2 + $0x88] sm:$0xff] }
  0x51   : > { %468 = vmatpush1.msra.mxu0 %v251_v34  ;;  %539 = vmatpush1.msra.mxu1 %v253_v35  ;;  %v214_v53 = vld [vmem:[#allocation2 + $0x98] sm:$0xff]  ;;  %v211_v54 = vld [vmem:[#allocation2 + $0x80] sm:$0xff]  ;;  %v213_v55 = vld [vmem:[#allocation2 + $0x90] sm:$0xff] }
  0x52   : > { %469 = vmatprep.subr.mxu0 %v244_v36  ;;  %540 = vmatprep.subr.mxu1 %v246_v37  ;;  %v204_v56 = vld [vmem:[#allocation2 + $0x48] sm:$0xff]  ;;  %v206_v57 = vld [vmem:[#allocation2 + $0x58] sm:$0xff]  ;;  %v203_v58 = vld [vmem:[#allocation2 + $0x40] sm:$0xff] }
  0x53   : > { %470 = vmatpush1.msra.mxu0 %v243_v38  ;;  %541 = vmatpush1.msra.mxu1 %v245_v39  ;;  %v205_v59 = vld [vmem:[#allocation2 + $0x50] sm:$0xff]  ;;  %v196_v60 = vld [vmem:[#allocation2 + $0x8] sm:$0xff]  ;;  %v198_v61 = vld [vmem:[#allocation2 + $0x18] sm:$0xff] }
  0x54   : > { %471 = vmatprep.subr.mxu0 %v236_v40  ;;  %542 = vmatprep.subr.mxu1 %v238_v41  ;;  %v195_v62 = vld [vmem:[#allocation2] sm:$0xff]  ;;  %v197_v63 = vld [vmem:[#allocation2 + $0x10] sm:$0xff]  ;;  %v444_v0 = vld [vmem:[#allocation2 + $0x7c8] sm:$0xff] }
  0x55   : > { %472 = vmatpush1.msra.mxu0 %v235_v42  ;;  %543 = vmatpush1.msra.mxu1 %v237_v43  ;;  %v446_v1 = vld [vmem:[#allocation2 + $0x7d8] sm:$0xff]  ;;  %v443_v2 = vld [vmem:[#allocation2 + $0x7c0] sm:$0xff]  ;;  %v445_v3 = vld [vmem:[#allocation2 + $0x7d0] sm:$0xff] }
  0x56   : > { %473 = vmatprep.subr.mxu0 %v228_v44  ;;  %544 = vmatprep.subr.mxu1 %v230_v45  ;;  %v436_v4 = vld [vmem:[#allocation2 + $0x788] sm:$0xff]  ;;  %v438_v5 = vld [vmem:[#allocation2 + $0x798] sm:$0xff]  ;;  %v435_v6 = vld [vmem:[#allocation2 + $0x780] sm:$0xff] }
  0x57   : > { %474 = vmatpush1.msra.mxu0 %v227_v46  ;;  %545 = vmatpush1.msra.mxu1 %v229_v47  ;;  %v437_v7 = vld [vmem:[#allocation2 + $0x790] sm:$0xff]  ;;  %v428_v8 = vld [vmem:[#allocation2 + $0x748] sm:$0xff]  ;;  %v430_v9 = vld [vmem:[#allocation2 + $0x758] sm:$0xff] }
  0x58   : > { %475 = vmatprep.subr.mxu0 %v220_v48  ;;  %546 = vmatprep.subr.mxu1 %v222_v49  ;;  %v427_v10 = vld [vmem:[#allocation2 + $0x740] sm:$0xff]  ;;  %v429_v11 = vld [vmem:[#allocation2 + $0x750] sm:$0xff]  ;;  %v420_v12 = vld [vmem:[#allocation2 + $0x708] sm:$0xff] }
  0x59   : > { %476 = vmatpush1.msra.mxu0 %v219_v50  ;;  %547 = vmatpush1.msra.mxu1 %v221_v51  ;;  %v422_v13 = vld [vmem:[#allocation2 + $0x718] sm:$0xff]  ;;  %v419_v14 = vld [vmem:[#allocation2 + $0x700] sm:$0xff]  ;;  %v421_v15 = vld [vmem:[#allocation2 + $0x710] sm:$0xff] }
  0x5a   : > { %477 = vmatprep.subr.mxu0 %v212_v52  ;;  %548 = vmatprep.subr.mxu1 %v214_v53  ;;  %v412_v16 = vld [vmem:[#allocation2 + $0x6c8] sm:$0xff]  ;;  %v414_v17 = vld [vmem:[#allocation2 + $0x6d8] sm:$0xff]  ;;  %v411_v18 = vld [vmem:[#allocation2 + $0x6c0] sm:$0xff] }
  0x5b   : > { %478 = vmatpush1.msra.mxu0 %v211_v54  ;;  %549 = vmatpush1.msra.mxu1 %v213_v55  ;;  %v413_v19 = vld [vmem:[#allocation2 + $0x6d0] sm:$0xff]  ;;  %v404_v20 = vld [vmem:[#allocation2 + $0x688] sm:$0xff]  ;;  %v406_v21 = vld [vmem:[#allocation2 + $0x698] sm:$0xff] }
  0x5c   : > { %479 = vmatprep.subr.mxu0 %v204_v56  ;;  %550 = vmatprep.subr.mxu1 %v206_v57  ;;  %v403_v22 = vld [vmem:[#allocation2 + $0x680] sm:$0xff]  ;;  %v405_v23 = vld [vmem:[#allocation2 + $0x690] sm:$0xff]  ;;  %v396_v24 = vld [vmem:[#allocation2 + $0x648] sm:$0xff] }
  0x5d   : > { %480 = vmatpush1.msra.mxu0 %v203_v58  ;;  %551 = vmatpush1.msra.mxu1 %v205_v59  ;;  %v398_v25 = vld [vmem:[#allocation2 + $0x658] sm:$0xff]  ;;  %v395_v26 = vld [vmem:[#allocation2 + $0x640] sm:$0xff]  ;;  %v397_v27 = vld [vmem:[#allocation2 + $0x650] sm:$0xff] }
  0x5e   : > { %481 = vmatprep.subr.mxu0 %v196_v60  ;;  %552 = vmatprep.subr.mxu1 %v198_v61  ;;  %v388_v28 = vld [vmem:[#allocation2 + $0x608] sm:$0xff]  ;;  %v390_v29 = vld [vmem:[#allocation2 + $0x618] sm:$0xff]  ;;  %v387_v30 = vld [vmem:[#allocation2 + $0x600] sm:$0xff] }
  0x5f   : > { %482 = vmatpush1.msra.mxu0 %v195_v62  ;;  %553 = vmatpush1.msra.mxu1 %v197_v63  ;;  %v389_v31 = vld [vmem:[#allocation2 + $0x610] sm:$0xff]  ;;  %v380_v32 = vld [vmem:[#allocation2 + $0x5c8] sm:$0xff]  ;;  %v382_v33 = vld [vmem:[#allocation2 + $0x5d8] sm:$0xff] }
  0x60   : > { %483 = vmatprep.subr.mxu0 %v444_v0  ;;  %554 = vmatprep.subr.mxu1 %v446_v1  ;;  %v379_v34 = vld [vmem:[#allocation2 + $0x5c0] sm:$0xff]  ;;  %v381_v35 = vld [vmem:[#allocation2 + $0x5d0] sm:$0xff]  ;;  %v372_v36 = vld [vmem:[#allocation2 + $0x588] sm:$0xff] }
  0x61   : > { %484 = vmatpush2.msra.mxu0 %v443_v2  ;;  %555 = vmatpush2.msra.mxu1 %v445_v3  ;;  %v374_v37 = vld [vmem:[#allocation2 + $0x598] sm:$0xff]  ;;  %v371_v38 = vld [vmem:[#allocation2 + $0x580] sm:$0xff]  ;;  %v373_v39 = vld [vmem:[#allocation2 + $0x590] sm:$0xff] }
  0x62   : > { %485 = vmatprep.subr.mxu0 %v436_v4  ;;  %556 = vmatprep.subr.mxu1 %v438_v5  ;;  %v364_v40 = vld [vmem:[#allocation2 + $0x548] sm:$0xff]  ;;  %v366_v41 = vld [vmem:[#allocation2 + $0x558] sm:$0xff]  ;;  %v363_v42 = vld [vmem:[#allocation2 + $0x540] sm:$0xff] }
  0x63   : > { %486 = vmatpush2.msra.mxu0 %v435_v6  ;;  %557 = vmatpush2.msra.mxu1 %v437_v7  ;;  %v365_v43 = vld [vmem:[#allocation2 + $0x550] sm:$0xff]  ;;  %v356_v44 = vld [vmem:[#allocation2 + $0x508] sm:$0xff]  ;;  %v358_v45 = vld [vmem:[#allocation2 + $0x518] sm:$0xff] }
  0x64   : > { %487 = vmatprep.subr.mxu0 %v428_v8  ;;  %558 = vmatprep.subr.mxu1 %v430_v9  ;;  %v355_v46 = vld [vmem:[#allocation2 + $0x500] sm:$0xff]  ;;  %v357_v47 = vld [vmem:[#allocation2 + $0x510] sm:$0xff]  ;;  %v348_v48 = vld [vmem:[#allocation2 + $0x4c8] sm:$0xff] }
  0x65   : > { %488 = vmatpush2.msra.mxu0 %v427_v10  ;;  %559 = vmatpush2.msra.mxu1 %v429_v11  ;;  %v350_v49 = vld [vmem:[#allocation2 + $0x4d8] sm:$0xff]  ;;  %v347_v50 = vld [vmem:[#allocation2 + $0x4c0] sm:$0xff]  ;;  %v349_v51 = vld [vmem:[#allocation2 + $0x4d0] sm:$0xff] }
  0x66   : > { %489 = vmatprep.subr.mxu0 %v420_v12  ;;  %560 = vmatprep.subr.mxu1 %v422_v13  ;;  %v340_v52 = vld [vmem:[#allocation2 + $0x488] sm:$0xff]  ;;  %v342_v53 = vld [vmem:[#allocation2 + $0x498] sm:$0xff]  ;;  %v339_v54 = vld [vmem:[#allocation2 + $0x480] sm:$0xff] }
  0x67   : > { %490 = vmatpush2.msra.mxu0 %v419_v14  ;;  %561 = vmatpush2.msra.mxu1 %v421_v15  ;;  %v341_v55 = vld [vmem:[#allocation2 + $0x490] sm:$0xff]  ;;  %v332_v56 = vld [vmem:[#allocation2 + $0x448] sm:$0xff]  ;;  %v334_v57 = vld [vmem:[#allocation2 + $0x458] sm:$0xff] }
  0x68   : > { %491 = vmatprep.subr.mxu0 %v412_v16  ;;  %562 = vmatprep.subr.mxu1 %v414_v17  ;;  %v331_v58 = vld [vmem:[#allocation2 + $0x440] sm:$0xff]  ;;  %v333_v59 = vld [vmem:[#allocation2 + $0x450] sm:$0xff]  ;;  %v324_v60 = vld [vmem:[#allocation2 + $0x408] sm:$0xff] }
  0x69   : > { %492 = vmatpush2.msra.mxu0 %v411_v18  ;;  %563 = vmatpush2.msra.mxu1 %v413_v19  ;;  %v326_v61 = vld [vmem:[#allocation2 + $0x418] sm:$0xff]  ;;  %v323_v62 = vld [vmem:[#allocation2 + $0x400] sm:$0xff]  ;;  %v325_v0 = vld [vmem:[#allocation2 + $0x410] sm:$0xff] }
  0x6a   : > { %493 = vmatprep.subr.mxu0 %v404_v20  ;;  %564 = vmatprep.subr.mxu1 %v406_v21  ;;  %v1240_v63 = vld [vmem:[%s1233_s16 + $0x8] sm:$0xff]  ;;  %v1243_v1 = vld [vmem:[%s1233_s16] sm:$0xff] }
  0x6b   : > { %494 = vmatpush2.msra.mxu0 %v403_v22  ;;  %565 = vmatpush2.msra.mxu1 %v405_v23  ;;  %v320_v2 = vld [vmem:[#allocation2 + $0x3e8] sm:$0xff]  ;;  %v322_v3 = vld [vmem:[#allocation2 + $0x3f8] sm:$0xff]  ;;  %v319_v4 = vld [vmem:[#allocation2 + $0x3e0] sm:$0xff] }
  0x6c   : > { %495 = vmatprep.subr.mxu0 %v396_v24  ;;  %566 = vmatprep.subr.mxu1 %v398_v25  ;;  %v321_v5 = vld [vmem:[#allocation2 + $0x3f0] sm:$0xff]  ;;  %v312_v6 = vld [vmem:[#allocation2 + $0x3a8] sm:$0xff]  ;;  %v314_v7 = vld [vmem:[#allocation2 + $0x3b8] sm:$0xff] }
  0x6d   : > { %496 = vmatpush2.msra.mxu0 %v395_v26  ;;  %567 = vmatpush2.msra.mxu1 %v397_v27  ;;  %v311_v8 = vld [vmem:[#allocation2 + $0x3a0] sm:$0xff]  ;;  %v313_v9 = vld [vmem:[#allocation2 + $0x3b0] sm:$0xff]  ;;  %v304_v10 = vld [vmem:[#allocation2 + $0x368] sm:$0xff] }
  0x6e   : > { %497 = vmatprep.subr.mxu0 %v388_v28  ;;  %568 = vmatprep.subr.mxu1 %v390_v29  ;;  %v306_v11 = vld [vmem:[#allocation2 + $0x378] sm:$0xff]  ;;  %v303_v12 = vld [vmem:[#allocation2 + $0x360] sm:$0xff]  ;;  %v305_v13 = vld [vmem:[#allocation2 + $0x370] sm:$0xff] }
  0x6f   : > { %498 = vmatpush2.msra.mxu0 %v387_v30  ;;  %569 = vmatpush2.msra.mxu1 %v389_v31  ;;  %v296_v14 = vld [vmem:[#allocation2 + $0x328] sm:$0xff]  ;;  %v298_v15 = vld [vmem:[#allocation2 + $0x338] sm:$0xff]  ;;  %v295_v16 = vld [vmem:[#allocation2 + $0x320] sm:$0xff] }
  0x70   : > { %499 = vmatprep.subr.mxu0 %v380_v32  ;;  %570 = vmatprep.subr.mxu1 %v382_v33  ;;  %v297_v17 = vld [vmem:[#allocation2 + $0x330] sm:$0xff]  ;;  %v288_v18 = vld [vmem:[#allocation2 + $0x2e8] sm:$0xff]  ;;  %v290_v19 = vld [vmem:[#allocation2 + $0x2f8] sm:$0xff] }
  0x71   : > { %500 = vmatpush2.msra.mxu0 %v379_v34  ;;  %571 = vmatpush2.msra.mxu1 %v381_v35  ;;  %v287_v20 = vld [vmem:[#allocation2 + $0x2e0] sm:$0xff]  ;;  %v289_v21 = vld [vmem:[#allocation2 + $0x2f0] sm:$0xff]  ;;  %v280_v22 = vld [vmem:[#allocation2 + $0x2a8] sm:$0xff] }
  0x72   : > { %501 = vmatprep.subr.mxu0 %v372_v36  ;;  %572 = vmatprep.subr.mxu1 %v374_v37  ;;  %v282_v23 = vld [vmem:[#allocation2 + $0x2b8] sm:$0xff]  ;;  %v279_v24 = vld [vmem:[#allocation2 + $0x2a0] sm:$0xff]  ;;  %v281_v25 = vld [vmem:[#allocation2 + $0x2b0] sm:$0xff] }
  0x73   : > { %502 = vmatpush2.msra.mxu0 %v371_v38  ;;  %573 = vmatpush2.msra.mxu1 %v373_v39  ;;  %v272_v26 = vld [vmem:[#allocation2 + $0x268] sm:$0xff]  ;;  %v274_v27 = vld [vmem:[#allocation2 + $0x278] sm:$0xff]  ;;  %v271_v28 = vld [vmem:[#allocation2 + $0x260] sm:$0xff] }
  0x74   : > { %503 = vmatprep.subr.mxu0 %v364_v40  ;;  %574 = vmatprep.subr.mxu1 %v366_v41  ;;  %v273_v29 = vld [vmem:[#allocation2 + $0x270] sm:$0xff]  ;;  %v264_v30 = vld [vmem:[#allocation2 + $0x228] sm:$0xff]  ;;  %v266_v31 = vld [vmem:[#allocation2 + $0x238] sm:$0xff] }
  0x75   : > { %504 = vmatpush2.msra.mxu0 %v363_v42  ;;  %575 = vmatpush2.msra.mxu1 %v365_v43  ;;  %v263_v32 = vld [vmem:[#allocation2 + $0x220] sm:$0xff]  ;;  %v265_v33 = vld [vmem:[#allocation2 + $0x230] sm:$0xff]  ;;  %v256_v34 = vld [vmem:[#allocation2 + $0x1e8] sm:$0xff] }
  0x76   : > { %505 = vmatprep.subr.mxu0 %v356_v44  ;;  %576 = vmatprep.subr.mxu1 %v358_v45  ;;  %v258_v35 = vld [vmem:[#allocation2 + $0x1f8] sm:$0xff]  ;;  %v255_v36 = vld [vmem:[#allocation2 + $0x1e0] sm:$0xff]  ;;  %v257_v37 = vld [vmem:[#allocation2 + $0x1f0] sm:$0xff] }
  0x77   : > { %506 = vmatpush2.msra.mxu0 %v355_v46  ;;  %577 = vmatpush2.msra.mxu1 %v357_v47  ;;  %v248_v38 = vld [vmem:[#allocation2 + $0x1a8] sm:$0xff]  ;;  %v250_v39 = vld [vmem:[#allocation2 + $0x1b8] sm:$0xff]  ;;  %v247_v40 = vld [vmem:[#allocation2 + $0x1a0] sm:$0xff] }
  0x78   : > { %507 = vmatprep.subr.mxu0 %v348_v48  ;;  %578 = vmatprep.subr.mxu1 %v350_v49  ;;  %v249_v41 = vld [vmem:[#allocation2 + $0x1b0] sm:$0xff]  ;;  %v240_v42 = vld [vmem:[#allocation2 + $0x168] sm:$0xff]  ;;  %v242_v43 = vld [vmem:[#allocation2 + $0x178] sm:$0xff] }
  0x79   : > { %508 = vmatpush2.msra.mxu0 %v347_v50  ;;  %579 = vmatpush2.msra.mxu1 %v349_v51  ;;  %v239_v44 = vld [vmem:[#allocation2 + $0x160] sm:$0xff]  ;;  %v241_v45 = vld [vmem:[#allocation2 + $0x170] sm:$0xff]  ;;  %v232_v46 = vld [vmem:[#allocation2 + $0x128] sm:$0xff] }
  0x7a   : > { %509 = vmatprep.subr.mxu0 %v340_v52  ;;  %580 = vmatprep.subr.mxu1 %v342_v53  ;;  %v234_v47 = vld [vmem:[#allocation2 + $0x138] sm:$0xff]  ;;  %v231_v48 = vld [vmem:[#allocation2 + $0x120] sm:$0xff]  ;;  %v233_v49 = vld [vmem:[#allocation2 + $0x130] sm:$0xff] }
  0x7b   : > { %510 = vmatpush2.msra.mxu0 %v339_v54  ;;  %581 = vmatpush2.msra.mxu1 %v341_v55  ;;  %v224_v50 = vld [vmem:[#allocation2 + $0xe8] sm:$0xff]  ;;  %v226_v51 = vld [vmem:[#allocation2 + $0xf8] sm:$0xff]  ;;  %v223_v52 = vld [vmem:[#allocation2 + $0xe0] sm:$0xff] }
  0x7c   : > { %511 = vmatprep.subr.mxu0 %v332_v56  ;;  %582 = vmatprep.subr.mxu1 %v334_v57  ;;  %v225_v53 = vld [vmem:[#allocation2 + $0xf0] sm:$0xff]  ;;  %v216_v54 = vld [vmem:[#allocation2 + $0xa8] sm:$0xff]  ;;  %v218_v55 = vld [vmem:[#allocation2 + $0xb8] sm:$0xff] }
  0x7d   : > { %512 = vmatpush2.msra.mxu0 %v331_v58  ;;  %583 = vmatpush2.msra.mxu1 %v333_v59  ;;  %v215_v56 = vld [vmem:[#allocation2 + $0xa0] sm:$0xff]  ;;  %v217_v57 = vld [vmem:[#allocation2 + $0xb0] sm:$0xff]  ;;  %v208_v58 = vld [vmem:[#allocation2 + $0x68] sm:$0xff] }
  0x7e   : > { %513 = vmatprep.subr.mxu0 %v324_v60  ;;  %584 = vmatprep.subr.mxu1 %v326_v61  ;;  %v210_v59 = vld [vmem:[#allocation2 + $0x78] sm:$0xff]  ;;  %v207_v60 = vld [vmem:[#allocation2 + $0x60] sm:$0xff]  ;;  %v209_v61 = vld [vmem:[#allocation2 + $0x70] sm:$0xff] }
  0x7f   : > { %514 = vmatpush2.msra.mxu0 %v323_v62  ;;  %515 = vmatprep.mubr.f32.mxu0 %v1240_v63  ;;  %v200_v62 = vld [vmem:[#allocation2 + $0x28] sm:$0xff] }
  0x80   : > { %585 = vmatpush2.msra.mxu1 %v325_v0  ;;  %586 = vmatprep.mubr.f32.mxu1 %v1240_v63  ;;  %v202_v0 = vld [vmem:[#allocation2 + $0x38] sm:$0xff] }
  0x81   : > { %516 = vmatmul.mubr.f32.vlgmr.msra.gmra.mxu0 %v1243_v1  ;;  %587 = vmatmul.mubr.f32.vlgmr.msra.gmra.mxu1 %v1243_v1 }
  0x82   : > { %593 = vmatprep.subr.mxu0 %v320_v2  ;;  %664 = vmatprep.subr.mxu1 %v322_v3  ;;  %v199_v2 = vld [vmem:[#allocation2 + $0x20] sm:$0xff]  ;;  %v201_v3 = vld [vmem:[#allocation2 + $0x30] sm:$0xff] }
  0x83   : > { %594 = vmatpush1.msra.mxu0 %v319_v4  ;;  %665 = vmatpush1.msra.mxu1 %v321_v5  ;;  %v448_v4 = vld [vmem:[#allocation2 + $0x7e8] sm:$0xff]  ;;  %v450_v5 = vld [vmem:[#allocation2 + $0x7f8] sm:$0xff] }
  0x84   : > { %595 = vmatprep.subr.mxu0 %v312_v6  ;;  %666 = vmatprep.subr.mxu1 %v314_v7  ;;  %v447_v6 = vld [vmem:[#allocation2 + $0x7e0] sm:$0xff]  ;;  %v449_v7 = vld [vmem:[#allocation2 + $0x7f0] sm:$0xff] }
  0x85   : > { %596 = vmatpush1.msra.mxu0 %v311_v8  ;;  %667 = vmatpush1.msra.mxu1 %v313_v9  ;;  %v440_v8 = vld [vmem:[#allocation2 + $0x7a8] sm:$0xff]  ;;  %v442_v9 = vld [vmem:[#allocation2 + $0x7b8] sm:$0xff] }
  0x86   : > { %597 = vmatprep.subr.mxu0 %v304_v10  ;;  %668 = vmatprep.subr.mxu1 %v306_v11  ;;  %v439_v10 = vld [vmem:[#allocation2 + $0x7a0] sm:$0xff]  ;;  %v441_v11 = vld [vmem:[#allocation2 + $0x7b0] sm:$0xff] }
  0x87   : > { %598 = vmatpush1.msra.mxu0 %v303_v12  ;;  %669 = vmatpush1.msra.mxu1 %v305_v13  ;;  %v432_v12 = vld [vmem:[#allocation2 + $0x768] sm:$0xff]  ;;  %v434_v13 = vld [vmem:[#allocation2 + $0x778] sm:$0xff] }
  0x88   : > { %599 = vmatprep.subr.mxu0 %v296_v14  ;;  %670 = vmatprep.subr.mxu1 %v298_v15  ;;  %v431_v14 = vld [vmem:[#allocation2 + $0x760] sm:$0xff]  ;;  %v433_v15 = vld [vmem:[#allocation2 + $0x770] sm:$0xff] }
  0x89   : > { %600 = vmatpush1.msra.mxu0 %v295_v16  ;;  %671 = vmatpush1.msra.mxu1 %v297_v17  ;;  %v424_v16 = vld [vmem:[#allocation2 + $0x728] sm:$0xff]  ;;  %v426_v17 = vld [vmem:[#allocation2 + $0x738] sm:$0xff] }
  0x8a   : > { %601 = vmatprep.subr.mxu0 %v288_v18  ;;  %672 = vmatprep.subr.mxu1 %v290_v19  ;;  %v423_v18 = vld [vmem:[#allocation2 + $0x720] sm:$0xff]  ;;  %v425_v19 = vld [vmem:[#allocation2 + $0x730] sm:$0xff] }
  0x8b   : > { %602 = vmatpush1.msra.mxu0 %v287_v20  ;;  %673 = vmatpush1.msra.mxu1 %v289_v21  ;;  %v416_v20 = vld [vmem:[#allocation2 + $0x6e8] sm:$0xff]  ;;  %v418_v21 = vld [vmem:[#allocation2 + $0x6f8] sm:$0xff] }
  0x8c   : > { %603 = vmatprep.subr.mxu0 %v280_v22  ;;  %674 = vmatprep.subr.mxu1 %v282_v23  ;;  %v415_v22 = vld [vmem:[#allocation2 + $0x6e0] sm:$0xff]  ;;  %v417_v23 = vld [vmem:[#allocation2 + $0x6f0] sm:$0xff] }
  0x8d   : > { %604 = vmatpush1.msra.mxu0 %v279_v24  ;;  %675 = vmatpush1.msra.mxu1 %v281_v25  ;;  %v408_v24 = vld [vmem:[#allocation2 + $0x6a8] sm:$0xff]  ;;  %v410_v25 = vld [vmem:[#allocation2 + $0x6b8] sm:$0xff] }
  0x8e   : > { %605 = vmatprep.subr.mxu0 %v272_v26  ;;  %676 = vmatprep.subr.mxu1 %v274_v27  ;;  %v407_v26 = vld [vmem:[#allocation2 + $0x6a0] sm:$0xff]  ;;  %v409_v27 = vld [vmem:[#allocation2 + $0x6b0] sm:$0xff] }
  0x8f   : > { %606 = vmatpush1.msra.mxu0 %v271_v28  ;;  %677 = vmatpush1.msra.mxu1 %v273_v29  ;;  %v400_v28 = vld [vmem:[#allocation2 + $0x668] sm:$0xff]  ;;  %v402_v29 = vld [vmem:[#allocation2 + $0x678] sm:$0xff] }
  0x90   : > { %607 = vmatprep.subr.mxu0 %v264_v30  ;;  %678 = vmatprep.subr.mxu1 %v266_v31  ;;  %v399_v30 = vld [vmem:[#allocation2 + $0x660] sm:$0xff]  ;;  %v401_v31 = vld [vmem:[#allocation2 + $0x670] sm:$0xff] }
  0x91   : > { %608 = vmatpush1.msra.mxu0 %v263_v32  ;;  %679 = vmatpush1.msra.mxu1 %v265_v33  ;;  %v392_v32 = vld [vmem:[#allocation2 + $0x628] sm:$0xff]  ;;  %v394_v33 = vld [vmem:[#allocation2 + $0x638] sm:$0xff] }
  0x92   : > { %609 = vmatprep.subr.mxu0 %v256_v34  ;;  %680 = vmatprep.subr.mxu1 %v258_v35  ;;  %v391_v34 = vld [vmem:[#allocation2 + $0x620] sm:$0xff]  ;;  %v393_v35 = vld [vmem:[#allocation2 + $0x630] sm:$0xff] }
  0x93   : > { %610 = vmatpush1.msra.mxu0 %v255_v36  ;;  %681 = vmatpush1.msra.mxu1 %v257_v37  ;;  %v384_v36 = vld [vmem:[#allocation2 + $0x5e8] sm:$0xff]  ;;  %v386_v37 = vld [vmem:[#allocation2 + $0x5f8] sm:$0xff] }
  0x94   : > { %611 = vmatprep.subr.mxu0 %v248_v38  ;;  %682 = vmatprep.subr.mxu1 %v250_v39  ;;  %v383_v38 = vld [vmem:[#allocation2 + $0x5e0] sm:$0xff]  ;;  %v385_v39 = vld [vmem:[#allocation2 + $0x5f0] sm:$0xff] }
  0x95   : > { %612 = vmatpush1.msra.mxu0 %v247_v40  ;;  %683 = vmatpush1.msra.mxu1 %v249_v41  ;;  %v376_v40 = vld [vmem:[#allocation2 + $0x5a8] sm:$0xff]  ;;  %v378_v41 = vld [vmem:[#allocation2 + $0x5b8] sm:$0xff] }
  0x96   : > { %613 = vmatprep.subr.mxu0 %v240_v42  ;;  %684 = vmatprep.subr.mxu1 %v242_v43  ;;  %v375_v42 = vld [vmem:[#allocation2 + $0x5a0] sm:$0xff]  ;;  %v377_v43 = vld [vmem:[#allocation2 + $0x5b0] sm:$0xff] }
  0x97   : > { %614 = vmatpush1.msra.mxu0 %v239_v44  ;;  %685 = vmatpush1.msra.mxu1 %v241_v45  ;;  %v368_v44 = vld [vmem:[#allocation2 + $0x568] sm:$0xff]  ;;  %v370_v45 = vld [vmem:[#allocation2 + $0x578] sm:$0xff] }
  0x98   : > { %615 = vmatprep.subr.mxu0 %v232_v46  ;;  %686 = vmatprep.subr.mxu1 %v234_v47  ;;  %v367_v46 = vld [vmem:[#allocation2 + $0x560] sm:$0xff]  ;;  %v369_v47 = vld [vmem:[#allocation2 + $0x570] sm:$0xff] }
  0x99   : > { %616 = vmatpush1.msra.mxu0 %v231_v48  ;;  %687 = vmatpush1.msra.mxu1 %v233_v49  ;;  %v360_v48 = vld [vmem:[#allocation2 + $0x528] sm:$0xff]  ;;  %v362_v49 = vld [vmem:[#allocation2 + $0x538] sm:$0xff] }
  0x9a   : > { %617 = vmatprep.subr.mxu0 %v224_v50  ;;  %688 = vmatprep.subr.mxu1 %v226_v51  ;;  %v359_v50 = vld [vmem:[#allocation2 + $0x520] sm:$0xff]  ;;  %v361_v51 = vld [vmem:[#allocation2 + $0x530] sm:$0xff] }
  0x9b   : > { %618 = vmatpush1.msra.mxu0 %v223_v52  ;;  %689 = vmatpush1.msra.mxu1 %v225_v53  ;;  %v352_v52 = vld [vmem:[#allocation2 + $0x4e8] sm:$0xff]  ;;  %v354_v53 = vld [vmem:[#allocation2 + $0x4f8] sm:$0xff] }
  0x9c   : > { %619 = vmatprep.subr.mxu0 %v216_v54  ;;  %690 = vmatprep.subr.mxu1 %v218_v55  ;;  %v351_v54 = vld [vmem:[#allocation2 + $0x4e0] sm:$0xff]  ;;  %v353_v55 = vld [vmem:[#allocation2 + $0x4f0] sm:$0xff] }
  0x9d   : > { %620 = vmatpush1.msra.mxu0 %v215_v56  ;;  %691 = vmatpush1.msra.mxu1 %v217_v57  ;;  %v344_v56 = vld [vmem:[#allocation2 + $0x4a8] sm:$0xff]  ;;  %v346_v57 = vld [vmem:[#allocation2 + $0x4b8] sm:$0xff] }
  0x9e   : > { %621 = vmatprep.subr.mxu0 %v208_v58  ;;  %692 = vmatprep.subr.mxu1 %v210_v59  ;;  %v343_v58 = vld [vmem:[#allocation2 + $0x4a0] sm:$0xff]  ;;  %v345_v59 = vld [vmem:[#allocation2 + $0x4b0] sm:$0xff] }
  0x9f   : > { %622 = vmatpush1.msra.mxu0 %v207_v60  ;;  %693 = vmatpush1.msra.mxu1 %v209_v61  ;;  %v336_v60 = vld [vmem:[#allocation2 + $0x468] sm:$0xff]  ;;  %v338_v61 = vld [vmem:[#allocation2 + $0x478] sm:$0xff] }
  0xa0   : > { %623 = vmatprep.subr.mxu0 %v200_v62  ;;  %694 = vmatprep.subr.mxu1 %v202_v0  ;;  %v335_v62 = vld [vmem:[#allocation2 + $0x460] sm:$0xff]  ;;  %v337_v0 = vld [vmem:[#allocation2 + $0x470] sm:$0xff] }
  0xa1   : > { %624 = vmatpush1.msra.mxu0 %v199_v2  ;;  %695 = vmatpush1.msra.mxu1 %v201_v3  ;;  %v328_v2 = vld [vmem:[#allocation2 + $0x428] sm:$0xff]  ;;  %v330_v3 = vld [vmem:[#allocation2 + $0x438] sm:$0xff] }
  0xa2   : > { %625 = vmatprep.subr.mxu0 %v448_v4  ;;  %696 = vmatprep.subr.mxu1 %v450_v5  ;;  %v327_v4 = vld [vmem:[#allocation2 + $0x420] sm:$0xff]  ;;  %v329_v5 = vld [vmem:[#allocation2 + $0x430] sm:$0xff] }
  0xa3   : > { %626 = vmatpush2.msra.mxu0 %v447_v6  ;;  %697 = vmatpush2.msra.mxu1 %v449_v7 }
  0xa4   : > { %627 = vmatprep.subr.mxu0 %v440_v8  ;;  %698 = vmatprep.subr.mxu1 %v442_v9 }
  0xa5   : > { %628 = vmatpush2.msra.mxu0 %v439_v10  ;;  %699 = vmatpush2.msra.mxu1 %v441_v11 }
  0xa6   : > { %629 = vmatprep.subr.mxu0 %v432_v12  ;;  %700 = vmatprep.subr.mxu1 %v434_v13 }
  0xa7   : > { %630 = vmatpush2.msra.mxu0 %v431_v14  ;;  %701 = vmatpush2.msra.mxu1 %v433_v15 }
  0xa8   : > { %631 = vmatprep.subr.mxu0 %v424_v16  ;;  %702 = vmatprep.subr.mxu1 %v426_v17 }
  0xa9   : > { %632 = vmatpush2.msra.mxu0 %v423_v18  ;;  %703 = vmatpush2.msra.mxu1 %v425_v19 }
  0xaa   : > { %633 = vmatprep.subr.mxu0 %v416_v20  ;;  %704 = vmatprep.subr.mxu1 %v418_v21 }
  0xab   : > { %634 = vmatpush2.msra.mxu0 %v415_v22  ;;  %705 = vmatpush2.msra.mxu1 %v417_v23 }
  0xac   : > { %635 = vmatprep.subr.mxu0 %v408_v24  ;;  %706 = vmatprep.subr.mxu1 %v410_v25 }
  0xad   : > { %636 = vmatpush2.msra.mxu0 %v407_v26  ;;  %707 = vmatpush2.msra.mxu1 %v409_v27 }
  0xae   : > { %637 = vmatprep.subr.mxu0 %v400_v28  ;;  %708 = vmatprep.subr.mxu1 %v402_v29 }
  0xaf   : > { %638 = vmatpush2.msra.mxu0 %v399_v30  ;;  %709 = vmatpush2.msra.mxu1 %v401_v31 }
  0xb0   : > { %639 = vmatprep.subr.mxu0 %v392_v32  ;;  %710 = vmatprep.subr.mxu1 %v394_v33 }
  0xb1   : > { %640 = vmatpush2.msra.mxu0 %v391_v34  ;;  %711 = vmatpush2.msra.mxu1 %v393_v35 }
  0xb2   : > { %641 = vmatprep.subr.mxu0 %v384_v36  ;;  %712 = vmatprep.subr.mxu1 %v386_v37 }
  0xb3   : > { %642 = vmatpush2.msra.mxu0 %v383_v38  ;;  %713 = vmatpush2.msra.mxu1 %v385_v39 }
  0xb4   : > { %643 = vmatprep.subr.mxu0 %v376_v40  ;;  %714 = vmatprep.subr.mxu1 %v378_v41 }
  0xb5   : > { %644 = vmatpush2.msra.mxu0 %v375_v42  ;;  %715 = vmatpush2.msra.mxu1 %v377_v43 }
  0xb6   : > { %645 = vmatprep.subr.mxu0 %v368_v44  ;;  %716 = vmatprep.subr.mxu1 %v370_v45 }
  0xb7   : > { %646 = vmatpush2.msra.mxu0 %v367_v46  ;;  %717 = vmatpush2.msra.mxu1 %v369_v47 }
  0xb8   : > { %647 = vmatprep.subr.mxu0 %v360_v48  ;;  %718 = vmatprep.subr.mxu1 %v362_v49 }
  0xb9   : > { %648 = vmatpush2.msra.mxu0 %v359_v50  ;;  %719 = vmatpush2.msra.mxu1 %v361_v51 }
  0xba   : > { %649 = vmatprep.subr.mxu0 %v352_v52  ;;  %720 = vmatprep.subr.mxu1 %v354_v53 }
  0xbb   : > { %650 = vmatpush2.msra.mxu0 %v351_v54  ;;  %721 = vmatpush2.msra.mxu1 %v353_v55 }
  0xbc   : > { %651 = vmatprep.subr.mxu0 %v344_v56  ;;  %722 = vmatprep.subr.mxu1 %v346_v57 }
  0xbd   : > { %652 = vmatpush2.msra.mxu0 %v343_v58  ;;  %723 = vmatpush2.msra.mxu1 %v345_v59 }
  0xbe   : > { %653 = vmatprep.subr.mxu0 %v336_v60  ;;  %724 = vmatprep.subr.mxu1 %v338_v61 }
  0xbf   : > { %654 = vmatpush2.msra.mxu0 %v335_v62  ;;  %725 = vmatpush2.msra.mxu1 %v337_v0 }
  0xc0   : > { %655 = vmatprep.subr.mxu0 %v328_v2  ;;  %726 = vmatprep.subr.mxu1 %v330_v3 }
  0xc1   : > { %656 = vmatpush2.msra.mxu0 %v327_v4  ;;  %657 = vmatprep.mubr.f32.mxu0 %v1240_v63 }
  0xc2   : > { %727 = vmatpush2.msra.mxu1 %v329_v5  ;;  %728 = vmatprep.mubr.f32.mxu1 %v1240_v63 }
  0xc3   : > { %658 = vmatmul.mubr.f32.vlgmr.msra.gmra.mxu0 %v1243_v1  ;;  %729 = vmatmul.mubr.f32.vlgmr.msra.gmra.mxu1 %v1243_v1 }
 0x141   : > { %v517_v6 = vpop.f32.mrf.mxu0  ;;  %v588_v7 = vpop.f32.mrf.mxu1 }
 0x142   : > { %735 = vst [vmem:[%s192_s19] sm:$0xff] %v517_v6  ;;  %737 = vst [vmem:[%s192_s19 + $0x10] sm:$0xff] %v588_v7 }
 0x143   : > { %v519_v8 = vpop.f32.mrf.mxu0  ;;  %v590_v9 = vpop.f32.mrf.mxu1 }
 0x144   : > { %736 = vst [vmem:[%s192_s19 + $0x8] sm:$0xff] %v519_v8  ;;  %738 = vst [vmem:[%s192_s19 + $0x18] sm:$0xff] %v590_v9 }
 0x183   : > { %v659_v10 = vpop.f32.mrf.mxu0  ;;  %v730_v63 = vpop.f32.mrf.mxu1 }
 0x184   : > { %739 = vst [vmem:[%s192_s19 + $0x20] sm:$0xff] %v659_v10  ;;  %741 = vst [vmem:[%s192_s19 + $0x30] sm:$0xff] %v730_v63 }
 0x185   : > { %v661_v1 = vpop.f32.mrf.mxu0  ;;  %v732_v11 = vpop.f32.mrf.mxu1 }
 0x186   : > { %740 = vst [vmem:[%s192_s19 + $0x28] sm:$0xff] %v661_v1  ;;  %742 = vst [vmem:[%s192_s19 + $0x38] sm:$0xff] %v732_v11 }
 0x187   : > { %1017 = shalt.err (!%p1014_p5)
}
 0x188   : > { %s1018_s30 = scalar_lea.hbm %s1258_s26, 1024  ;;  %s1022_s4 = scalar_lea.hbm %s1308_s2, 2048 }
 0x189   : > { %p1019_p7 = scmp.ne.s32.totalorder %s1258_s26, %s1018_s30  ;;  %p1023_p9 = scmp.lt.s32.totalorder %s1258_s26, %s1308_s2 }
 0x18a   : > { %p1024_p11 = scmp.lt.s32.totalorder %s1022_s4, %s1018_s30 }
 0x18b   : > { %p1020_p6 = pnand %p1019_p7, %p1197_p13 }
 0x18c   : > { %p1025_p10 = por %p1024_p11, %p1023_p9 }
 0x18d   : > { %p1021_p4 = pneg %p1020_p6 }
 0x18f   : > { %p1026_p1 = pnand %p1025_p10, %p1021_p4 }
 0x191   : > { %1029 = shalt.err (!%p1026_p1)
}
 0x192   : > { %881 = dma.vmem_to_hbm [thread:$0]  (%p1197_p13), %s1260_s22, 1024, %s1258_s26, %s744_s12  }
 0x193 PF: > { %s772_s16 = sand.u32 1, %s1068_s9   ;;  %p1320_p8 = scmp.ne.s32.totalorder %s1313_s20, 0 }
 0x194   : > { %p1321_p12 = scmp.ge.s32.totalorder %s1088_s14, 2  ;;  %s773_s17 = scalar_lea.sflag [#allocation4], %s772_s16 }
 0x196   : > { %p892_p0 = pnand %p1321_p12, %p1320_p8 }
 0x198   : > { %p893_p2 = pneg %p892_p0 }
 0x19a   : > { %1063 = dma.done.wait (%p893_p2), %s773_s17, 1024  }
 0x19b   : > { %1065 = vsyncadd (%p893_p2), %s773_s17, 4294966272  ;;  %s19_s14 = sadd.s32 1, %s1088_s14   ;;  %s1322_s9 = smov %s1072_s10 }
 0x19c   : > { %p16_p3 = scmp.ge.s32.totalorder %s19_s14, 4   ;;  %s1323_s10 = smov %s1076_s11 }
 0x19d   : > { %s1324_s11 = smov %s1206_s15  ;;  %s1325_s12 = smov %s1084_s13 }
 0x19e   : > { %s1326_s13 = smov %s1328_s25  ;;  %18 = sbr.rel (!%p16_p3) target bundleno = 7 (0x7), region = 78 }
 0x1a3   :  { %778 = vsyncpa [#allocation3], 1 }
 0x1a4   :  { %780 = vsyncpa [#allocation3 + $0x1], 1 }
 0x1a5   :  { %781 = vsyncpa [#allocation6], 1 }
 0x1a6   :  { %783 = vsyncpa [#allocation6 + $0x1], 1 }
 0x1a7   :  { %784 = vsyncpa [#allocation4], 1 }
 0x1a8   :  { %786 = vsyncpa [#allocation4 + $0x1], 1 }

</bundles_post_ra>
